<compile_context>
chip_gen: v5e
topology: v5e:2x2
jax: 0.10.0
libtpu: 0.0.40
codegen_flags: <defaults>
</compile_context>

<pallas_src>
import jax
import jax.numpy as jnp
import jax.scipy.linalg as jsl
from jax.experimental import pallas as pl
from jax.experimental.pallas import tpu as pltpu


# ----------------------------------------------------------------------------
# Helpers: hardware query + tile selection
# ----------------------------------------------------------------------------
def _round_up(v, m):
    return (v + m - 1) // m * m


def _vmem_capacity_bytes():
    # Generation-aware VMEM query (v5e/v6e: 128 MiB, v7x: 64 MiB per TC).
    try:
        cap = getattr(pltpu.get_tpu_info(), "vmem_capacity_bytes", None)
        if cap:
            return int(cap)
    except Exception:
        pass
    return 64 * 1024 * 1024  # conservative fallback (v7x-sized)


def _pick_tiles(M, OUT, cap):
    # Bigger tiles where VMEM allows (v5e/v6e), smaller caps at 64 MiB (v7x).
    tm_max = 512 if cap >= (96 << 20) else 256
    tn_max = 512
    tm = M if M <= tm_max else tm_max
    tn = OUT if OUT <= tn_max else tn_max
    # v7x 2-TC balance: give the "parallel" M axis >= 2 blocks when M is large
    # enough that the extra weight re-stream is amortized (>=128 rows per half).
    # Harmless on 1-TC chips (~0.35 us extra grid step).
    if M <= tm_max and M >= 256:
        tm = _round_up(pl.cdiv(M, 2), 8)
    return tm, tn


def _pick_tk(D, tk_max):
    # Prefer a lane-aligned reduction tile that exactly divides D (no padding).
    hi = min(tk_max, (D // 128) * 128)
    for tk in range(hi, 0, -128):
        if D % tk == 0:
            return tk, 0
    tk = 512 if hi >= 512 else max(hi, 128)
    return tk, _round_up(D, tk) - D


# ----------------------------------------------------------------------------
# Pallas kernels
# ----------------------------------------------------------------------------
def _oft_linear_kernel_fulld(x_ref, diag_ref, wt_ref, o_ref, xs_ref):
    """grid (i, j).  x:(tm,D)  diag:(1,D) f32  wT:(D,tn) bf16  o:(tm,tn)  xs:(tm,D) bf16."""

    @pl.when(pl.program_id(1) == 0)
    def _():
        # VPU broadcast-scale + cast to the MXU dtype, once per M tile.
        # (The j axis is "arbitrary"/sequential, so this caching is megacore-safe.)
        xs_ref[...] = (x_ref[...] * diag_ref[...]).astype(xs_ref.dtype)

    o_ref[...] = jnp.dot(xs_ref[...], wt_ref[...],
                         preferred_element_type=jnp.float32).astype(o_ref.dtype)


def _oft_linear_kernel_ktiled(x_ref, diag_ref, wt_ref, o_ref, acc_ref):
    """grid (i, j, k).  x:(tm,tk)  diag:(1,tk)  wT:(tk,tn)  o:(tm,tn)  acc:(tm,tn) f32."""
    k = pl.program_id(2)

    @pl.when(k == 0)
    def _():
        acc_ref[...] = jnp.zeros_like(acc_ref)

    xs = (x_ref[...] * diag_ref[...]).astype(wt_ref.dtype)
    acc_ref[...] += jnp.dot(xs, wt_ref[...], preferred_element_type=jnp.float32)

    @pl.when(k == pl.num_programs(2) - 1)
    def _():
        o_ref[...] = acc_ref[...].astype(o_ref.dtype)


# ----------------------------------------------------------------------------
# Wrapper:  (x_flat * diag) @ w_t
# ----------------------------------------------------------------------------
def oft_linear_pallas(x_flat, diag, w_t, *, force_k_split=False, tk_max=1024):
    """x_flat:(M, D) activation, diag:(D,) f32 scale, w_t:(D, OUT) bf16 -> (M, OUT)."""
    M, D = x_flat.shape
    OUT = w_t.shape[1]
    x_bytes = jnp.dtype(x_flat.dtype).itemsize
    w_bytes = jnp.dtype(w_t.dtype).itemsize

    cap = _vmem_capacity_bytes()
    tm, tn = _pick_tiles(M, OUT, cap)
    gm, gn = pl.cdiv(M, tm), pl.cdiv(OUT, tn)

    diag2d = diag.astype(jnp.float32).reshape(1, D)
    out_shape = jax.ShapeDtypeStruct((M, OUT), x_flat.dtype)
    cost = pl.CostEstimate(
        flops=2 * M * D * OUT + M * D, transcendentals=0,
        bytes_accessed=M * D * x_bytes + D * OUT * w_bytes + M * OUT * x_bytes + D * 4)

    # Working set of the full-D path: double-buffered inputs + xs scratch + output bufs.
    full_d_bytes = (2 * tm * D * x_bytes + 2 * D * tn * w_bytes + 2 * D * 4
                    + 2 * tm * tn * x_bytes + tm * D * w_bytes)
    budget = int(cap * 0.45)

    if full_d_bytes <= budget and not force_k_split:
        # No padding / slicing: Pallas masks M / OUT edge blocks; D is one full block.
        return pl.pallas_call(
            _oft_linear_kernel_fulld,
            out_shape=out_shape,
            grid=(gm, gn),
            in_specs=[
                pl.BlockSpec((tm, D), lambda i, j: (i, 0)),   # x rows tile
                pl.BlockSpec((1, D), lambda i, j: (0, 0)),    # diag (resident)
                pl.BlockSpec((D, tn), lambda i, j: (0, j)),   # W^T column tile
            ],
            out_specs=pl.BlockSpec((tm, tn), lambda i, j: (i, j)),
            scratch_shapes=[pltpu.VMEM((tm, D), w_t.dtype)],
            compiler_params=pltpu.CompilerParams(
                dimension_semantics=("parallel", "arbitrary"),
                vmem_limit_bytes=min(int(cap * 0.9),
                                     max(2 * full_d_bytes, 32 << 20))),
            cost_estimate=cost,
        )(x_flat, diag2d, w_t)

    # ---- K-tiled path: D too large to keep the whole reduction resident ----
    tk, pad = _pick_tk(D, tk_max)
    if pad:
        # The reduction dim must NOT be edge-masked (garbage would contaminate
        # valid outputs), so the rare non-divisible case is zero-padded.
        x_flat = jnp.pad(x_flat, ((0, 0), (0, pad)))
        w_t = jnp.pad(w_t, ((0, pad), (0, 0)))
        diag2d = jnp.pad(diag2d, ((0, 0), (0, pad)))
    gk = (D + pad) // tk

    step_bytes = (2 * tm * tk * x_bytes + 2 * tk * tn * w_bytes + 2 * tk * 4
                  + 2 * tm * tn * x_bytes + tm * tn * 4)
    return pl.pallas_call(
        _oft_linear_kernel_ktiled,
        out_shape=out_shape,
        grid=(gm, gn, gk),
        in_specs=[
            pl.BlockSpec((tm, tk), lambda i, j, k: (i, k)),
            pl.BlockSpec((1, tk), lambda i, j, k: (0, k)),
            pl.BlockSpec((tk, tn), lambda i, j, k: (k, j)),
        ],
        out_specs=pl.BlockSpec((tm, tn), lambda i, j, k: (i, j)),
        scratch_shapes=[pltpu.VMEM((tm, tn), jnp.float32)],
        compiler_params=pltpu.CompilerParams(
            dimension_semantics=("parallel", "parallel", "arbitrary"),
            vmem_limit_bytes=min(int(cap * 0.9), max(2 * step_bytes, 32 << 20))),
        cost_estimate=cost,
    )(x_flat, diag2d, w_t)


# ----------------------------------------------------------------------------
# Module wrapper (functional re-implementation of OFTInjectedLinear.forward,
# eval mode, block_share=False, bias=False).
# ----------------------------------------------------------------------------
class OFTInjectedLinearPallas:

    def __init__(self, in_features, out_features, key, bias=False,
                 num_tasks=5, pool_size=5, r=4, eps=1e-5,
                 is_coft=True, block_share=False):
        assert in_features % r == 0, "in_features must be divisible by r"
        assert not block_share, "only the block_share=False path is implemented"
        assert not bias, "reference example uses bias=False"
        self.in_features = in_features
        self.out_features = out_features
        self.num_tasks = num_tasks
        self.pool_size = pool_size
        self.r = r
        self.is_coft = is_coft
        d = in_features // r
        self.d = d
        self.eps = eps * d * d

        k_route, k_down, k_w = jax.random.split(key, 3)
        # PyTorch inits lora_route / lora_down to zeros; small deterministic
        # random values instead so the full compute path is exercised.
        self.lora_route = 0.02 * jax.random.normal(
            k_route, (num_tasks, in_features, pool_size), jnp.float32)
        self.lora_down = 0.02 * jax.random.normal(
            k_down, (num_tasks, r, d, d), jnp.float32)
        bound = float(in_features) ** -0.5            # nn.Linear default init range
        self.weight = jax.random.uniform(
            k_w, (out_features, in_features), jnp.float32, -bound, bound)
        # Frozen base weight: persist the transposed bf16 copy ONCE so the hot
        # path never pays a per-call weight.T / cast HBM round trip.
        self.weight_t = self.weight.T.astype(jnp.bfloat16)
        self.bias = None

    # --- glue helpers (plain JAX) ----------------------------------------
    def _project_batch(self, R):
        # R: (k, r, d, d); reference's I is zeros, so diff == R.
        eps = self.eps / jnp.sqrt(jnp.float32(self.r))
        norm = jnp.sqrt(jnp.sum(R * R, axis=(-2, -1), keepdims=True))
        return jnp.where(norm <= eps, R, eps * R / norm)

    def _cayley_batch(self, R):
        d = R.shape[-1]
        skew = 0.5 * (R - jnp.swapaxes(R, -1, -2))
        I = jnp.eye(d, dtype=R.dtype)
        # TODO(synk): jnp.linalg.inv (Cayley transform) has no Pallas TPU
        # primitive; the (k, r, d, d) batch is tiny so it stays in plain JAX.
        return jnp.matmul(I - skew, jnp.linalg.inv(I + skew))

    # --- forward ----------------------------------------------------------
    def __call__(self, x, x2=None, task_id=-1):
        B, S, D = x.shape
        assert D == self.in_features
        # reference's in-place `delta_w_all *= (B,D,D)` only broadcasts for B == 1
        assert B == 1

        if task_id <= self.num_tasks:
            lora_route_all = self.lora_route[task_id - 1][None]        # (1, D, P)
        else:
            lora_route_all = jnp.sum(self.lora_route, axis=0)[None]
        task_id = min(task_id, self.num_tasks)

        # eval-mode routing (module.training == False)
        src = x2 if x2 is not None else x
        input_mean = jnp.mean(src, axis=1)[:, None, :]                 # (B, 1, D)
        lora_omegas = jax.nn.softmax(
            jnp.matmul(input_mean, lora_route_all), axis=2)            # (B, 1, P)
        lora_omegas_mean = jnp.mean(lora_omegas, axis=(0, 1))[:task_id]
        k = min(task_id, 2)                                            # static
        _, I = jax.lax.top_k(lora_omegas_mean, k)                      # stays on device

        # Gather selected task blocks on device (no host round-trip).
        R_sel = jnp.take(self.lora_down, I, axis=0)                    # (k, r, d, d)
        if self.is_coft:
            R_sel = self._project_batch(R_sel)
            # the reference writes the COFT projection back into the parameter
            self.lora_down = self.lora_down.at[I].set(R_sel)
        Q = self._cayley_batch(R_sel)                                  # (k, r, d, d)

        # delta_w_all = eye(D) * prod_j(omega_j * blockdiag_j) is diagonal;
        # only the diagonal of each block-diagonal Cayley matrix matters.
        diag_blocks = jnp.diagonal(Q, axis1=-2, axis2=-1).reshape(k, D)   # (k, D)
        omegas_sel = jnp.take(jnp.mean(lora_omegas, axis=1)[0], I)        # (k,)  B == 1
        diag = jnp.prod(omegas_sel[:, None] * diag_blocks, axis=0)        # (D,), kept f32

        x_flat = x.reshape(B * S, D)
        out_flat = oft_linear_pallas(x_flat, diag, self.weight_t)         # (B*S, OUT)
        return out_flat.reshape(B, S, self.out_features)


# ----------------------------------------------------------------------------
# Pure-JAX reference mirroring the PyTorch forward (for the self-test only).
# ----------------------------------------------------------------------------
def reference_forward(lora_route, lora_down, weight, x, task_id,
                      r, eps_total, is_coft, num_tasks):
    B, S, D = x.shape
    d = D // r
    if task_id <= num_tasks:
        lora_route_all = lora_route[task_id - 1][None]
    else:
        lora_route_all = jnp.sum(lora_route, axis=0)[None]
    task_id = min(task_id, num_tasks)
    input_mean = jnp.mean(x, axis=1)[:, None, :]
    lora_omegas = jax.nn.softmax(jnp.matmul(input_mean, lora_route_all), axis=2)
    lora_omegas_mean = jnp.mean(lora_omegas, axis=(0, 1))[:task_id]
    k = min(task_id, 2)
    _, I = jax.lax.top_k(lora_omegas_mean, k)
    I_list = [int(j) for j in jax.device_get(I)]        # host loop is fine in a test

    delta_w_all = jnp.eye(D, dtype=x.dtype)
    for j in I_list:
        R = lora_down[j]                                # (r, d, d)
        if is_coft:
            e = eps_total / jnp.sqrt(jnp.float32(r))
            norm = jnp.sqrt(jnp.sum(R * R, axis=(1, 2), keepdims=True))
            R = jnp.where(norm <= e, R, e * R / norm)
        skew = 0.5 * (R - jnp.transpose(R, (0, 2, 1)))
        I_d = jnp.eye(d, dtype=R.dtype)
        Q = jnp.matmul(I_d - skew, jnp.linalg.inv(I_d + skew))
        BD = jsl.block_diag(*[Q[i] for i in range(r)])
        omega = jnp.mean(lora_omegas[:, :, j], axis=1).reshape(-1, 1, 1)
        delta_w_all = delta_w_all * (omega * BD[None])[0]
    filt = jnp.matmul(delta_w_all, weight.T, precision=jax.lax.Precision.HIGHEST)
    return jnp.matmul(x, filt, precision=jax.lax.Precision.HIGHEST)


if __name__ == "__main__":
    key = jax.random.PRNGKey(0)
    k_param, k_x, k2_param, k2_x, k3a, k3b, k3c = jax.random.split(key, 7)

    # --- direct kernel check: full-D path AND forced K-split (reduction-tiled) path
    Mk, Dk, Ok = 64, 256, 256
    xk = jax.random.normal(k3a, (Mk, Dk), jnp.float32)
    dk = jax.random.uniform(k3b, (Dk,), jnp.float32, 0.5, 1.5)
    wk = (jax.random.normal(k3c, (Dk, Ok), jnp.float32) * Dk ** -0.5
          ).astype(jnp.bfloat16)
    ref_k = jnp.dot((xk * dk).astype(jnp.bfloat16).astype(jnp.float32),
                    wk.astype(jnp.float32))
    out_full = oft_linear_pallas(xk, dk, wk)
    out_kt = oft_linear_pallas(xk, dk, wk, force_k_split=True)
    jax.block_until_ready((out_full, out_kt))
    assert out_full.shape == (Mk, Ok) and out_kt.shape == (Mk, Ok)
    assert jnp.allclose(out_full, ref_k, atol=5e-3, rtol=5e-3), \
        float(jnp.max(jnp.abs(out_full - ref_k)))
    assert jnp.allclose(out_kt, ref_k, atol=5e-3, rtol=5e-3), \
        float(jnp.max(jnp.abs(out_kt - ref_k)))

    # --- tiny module shape (single block, full-dim tiles) ------------------
    B, S, D, OUT = 1, 8, 32, 32
    mod = OFTInjectedLinearPallas(D, OUT, k_param, bias=False,
                                  num_tasks=5, pool_size=5, r=4,
                                  eps=1e-5, is_coft=True, block_share=False)
    x = jax.random.normal(k_x, (B, S, D), jnp.float32)
    lora_down_snapshot = mod.lora_down
    out = mod(x, task_id=2)
    jax.block_until_ready(out)
    assert out.shape == (B, S, OUT) and out.dtype == jnp.float32
    ref = reference_forward(mod.lora_route, lora_down_snapshot, mod.weight, x,
                            2, mod.r, mod.eps, mod.is_coft, mod.num_tasks)
    assert jnp.allclose(out, ref, atol=1e-2, rtol=1e-2), \
        float(jnp.max(jnp.abs(out - ref)))

    # --- shape exercising the split-M parallel grid + masked edge block ----
    B2, S2, D2, OUT2 = 1, 300, 128, 384
    mod2 = OFTInjectedLinearPallas(D2, OUT2, k2_param, bias=False,
                                   num_tasks=5, pool_size=5, r=4,
                                   eps=1e-5, is_coft=True, block_share=False)
    x2 = jax.random.normal(k2_x, (B2, S2, D2), jnp.float32)
    lora_down_snapshot2 = mod2.lora_down
    out2 = mod2(x2, task_id=3)
    jax.block_until_ready(out2)
    assert out2.shape == (B2, S2, OUT2)
    ref2 = reference_forward(mod2.lora_route, lora_down_snapshot2, mod2.weight, x2,
                             3, mod2.r, mod2.eps, mod2.is_coft, mod2.num_tasks)
    assert jnp.allclose(out2, ref2, atol=1e-2, rtol=1e-2), \
        float(jnp.max(jnp.abs(out2 - ref2)))

    print("KERNEL_OK")
</pallas_src>

<mosaic_0001>
module attributes {stable_mosaic.version = 11 : i64} {
  func.func @_oft_linear_kernel_fulld(%arg0: i32, %arg1: i32, %arg2: memref<64x256xf32, #tpu.memory_space<vmem>>, %arg3: memref<1x256xf32, #tpu.memory_space<vmem>>, %arg4: memref<256x256xbf16, #tpu.memory_space<vmem>>, %arg5: memref<64x256xf32, #tpu.memory_space<vmem>>, %arg6: memref<64x256xbf16, #tpu.memory_space<vmem>>) attributes {dimension_semantics = [#tpu.dimension_semantics<parallel>, #tpu.dimension_semantics<arbitrary>], iteration_bounds = array<i64: 1, 1>, scalar_prefetch = 0 : i64, scratch_operands = 1 : i64, tpu.core_type = #tpu.core_type<tc>, window_params = [{transform_indices = @transform_0, window_bounds = array<i64: 64, 256>}, {pipeline_mode = #tpu.pipeline_mode<synchronous>, transform_indices = @transform_1, window_bounds = array<i64: 1, 256>}, {transform_indices = @transform_2, window_bounds = array<i64: 256, 256>}, {transform_indices = @transform_3, window_bounds = array<i64: 64, 256>}]} {
    %c0_i32 = arith.constant 0 : i32
    %0 = arith.cmpi eq, %arg1, %c0_i32 : i32
    %1 = arith.extui %0 : i1 to i32
    %c0_i32_0 = arith.constant 0 : i32
    %2 = arith.cmpi ne, %1, %c0_i32_0 : i32
    scf.if %2 {
      %c0_6 = arith.constant 0 : index
      %c0_7 = arith.constant 0 : index
      %7 = vector.load %arg2[%c0_6, %c0_7] : memref<64x256xf32, #tpu.memory_space<vmem>>, vector<64x256xf32>
      %c0_8 = arith.constant 0 : index
      %c0_9 = arith.constant 0 : index
      %8 = vector.load %arg3[%c0_8, %c0_9] : memref<1x256xf32, #tpu.memory_space<vmem>>, vector<1x256xf32>
      %9 = vector.broadcast %8 : vector<1x256xf32> to vector<64x256xf32>
      %10 = arith.mulf %7, %9 : vector<64x256xf32>
      %11 = arith.truncf %10 : vector<64x256xf32> to vector<64x256xbf16>
      %c0_10 = arith.constant 0 : index
      %c0_11 = arith.constant 0 : index
      %12 = vector.load %arg6[%c0_10, %c0_11] : memref<64x256xbf16, #tpu.memory_space<vmem>>, vector<64x256xbf16>
      tpu.vector_store %arg6[%c0_10, %c0_11], %11 {strides = array<i32>} : memref<64x256xbf16, #tpu.memory_space<vmem>>, vector<64x256xbf16>,
    } else {
    }
    %c0 = arith.constant 0 : index
    %c0_1 = arith.constant 0 : index
    %3 = vector.load %arg6[%c0, %c0_1] : memref<64x256xbf16, #tpu.memory_space<vmem>>, vector<64x256xbf16>
    %c0_2 = arith.constant 0 : index
    %c0_3 = arith.constant 0 : index
    %4 = vector.load %arg4[%c0_2, %c0_3] : memref<256x256xbf16, #tpu.memory_space<vmem>>, vector<256x256xbf16>
    %cst = arith.constant dense<0.000000e+00> : vector<64x256xf32>
    %5 = tpu.matmul %3, %4, %cst {dimension_numbers = #tpu.dot_dimension_numbers<[1], [0], [0], [1], [0, 0, 1, 1], [], []>} : vector<64x256xbf16>, vector<256x256xbf16>, vector<64x256xf32> -> vector<64x256xf32>
    %c0_4 = arith.constant 0 : index
    %c0_5 = arith.constant 0 : index
    %6 = vector.load %arg5[%c0_4, %c0_5] : memref<64x256xf32, #tpu.memory_space<vmem>>, vector<64x256xf32>
    tpu.vector_store %arg5[%c0_4, %c0_5], %5 {strides = array<i32>} : memref<64x256xf32, #tpu.memory_space<vmem>>, vector<64x256xf32>,
    return
  }
  func.func @transform_0(%arg0: i32, %arg1: i32) -> (i32, i32) {
    %c0_i32 = arith.constant 0 : i32
    %c0_i32_0 = arith.constant 0 : i32
    return %arg0, %c0_i32 : i32, i32
  }
  func.func @transform_1(%arg0: i32, %arg1: i32) -> (i32, i32) {
    %c0_i32 = arith.constant 0 : i32
    %c0_i32_0 = arith.constant 0 : i32
    %c0_i32_1 = arith.constant 0 : i32
    return %c0_i32, %c0_i32_0 : i32, i32
  }
  func.func @transform_2(%arg0: i32, %arg1: i32) -> (i32, i32) {
    %c0_i32 = arith.constant 0 : i32
    %c0_i32_0 = arith.constant 0 : i32
    return %c0_i32, %arg1 : i32, i32
  }
  func.func @transform_3(%arg0: i32, %arg1: i32) -> (i32, i32) {
    %c0_i32 = arith.constant 0 : i32
    return %arg0, %arg1 : i32, i32
  }
}

</mosaic_0001>

<bundles_post_ra>
// kernel: tpu_custom_call.1
= control target key start
LH: loop header
LB: loop body
LE: loop exit
PB: predicated region body
PF: predicated region fallthrough
CT: control target
= control target key end

     0   :  { %8 = vsyncpa [#allocation4], 0  ;;  %s892_s0 = inlined_call_operand.hbm [shape: f32[64,256], index: 0, kind: input, shape index: {}]   ;;  %s893_s1 = inlined_call_operand.hbm [shape: f32[1,256], index: 1, kind: input, shape index: {}]   ;;  %s894_s2 = inlined_call_operand.hbm [shape: bf16[256,256], index: 2, kind: input, shape index: {}]   ;;  %s895_s3 = inlined_call_operand.hbm [shape: f32[64,256], index: 3, kind: output, shape index: {}]  }
   0x1   :  { %9 = vsyncpa [#allocation7], 0  ;;  %s29_s14 = sshll.u32 %s893_s1, 4  ;;  %s30_s14 = int_to_ptr.hbm [resolvable:$true] %s29_s14 }
   0x2   :  { %10 = vsyncpa [#allocation5], 0  ;;  %s820_s15 = smov [#allocation6]   ;;  %s15_s19 = sshll.u32 %s892_s0, 4  ;;  %s16_s19 = int_to_ptr.hbm [resolvable:$true] %s15_s19 }
   0x3   :  { %s31_s16 = sshll.u32 %s820_s15, 4  ;;  %s821_s20 = smov [#allocation3]   ;;  %s32_s16 = int_to_ptr.vmem [resolvable:$true] %s31_s16 }
   0x4   :  { %34 = dma.hbm_to_vmem [thread:$0]  %s30_s14, 32, %s32_s16, [#allocation7]  }
   0x5   :  { %s17_s21 = sshll.u32 %s821_s20, 4  ;;  %s822_s22 = smov 256   ;;  %s18_s21 = int_to_ptr.vmem [resolvable:$true] %s17_s21 }
   0x6   :  { %s823_s23 = smov 16   ;;  %s39_s25 = sshll.u32 %s894_s2, 4  ;;  %s40_s25 = int_to_ptr.hbm [resolvable:$true] %s39_s25 }
   0x7   :  { %23 = dma.hbm_to_vmem [thread:$0]  %s16_s19, 2048, %s18_s21, [#allocation4], %s822_s22, %s822_s22, %s823_s23  }
   0x8   :  { %s824_s26 = smov [#allocation8]   ;;  %s825_s0 = smov 128  }
   0x9   :  { %s41_s27 = sshll.u32 %s824_s26, 4  ;;  %s826_s28 = smov 8   ;;  %s42_s27 = int_to_ptr.vmem [resolvable:$true] %s41_s27 }
   0xa   :  { %47 = dma.hbm_to_vmem [thread:$0]  %s40_s25, 4096, %s42_s27, [#allocation7], %s825_s0, %s825_s0, %s826_s28  }
   0xb   :  { %814 = dma.done.wait [#allocation4], 2048  }
   0xc   :  { %815 = vsyncadd [#allocation4], 4294965248 }
   0xd   :  { %816 = dma.done.wait [#allocation7], 4128  }
   0xe   :  { %817 = vsyncadd [#allocation7], 4294963168  ;;  %v600_v0 = vld [vmem:[#allocation8 + $0x70] sm:$0xf]  ;;  %v693_v1 = vld [vmem:[#allocation8 + $0x74] sm:$0xf0] }
   0xf   :  { %v664_v2 = vld [vmem:[#allocation8 + $0xf0] sm:$0xf]  ;;  %v601_v3 = vor.u32 %v693_v1, %v600_v0  ;;  %v709_v4 = vld [vmem:[#allocation8 + $0xf4] sm:$0xf0]  ;;  %v692_v5 = vld [vmem:[#allocation8 + $0x74] sm:$0xf] }
  0x10   :  { %v602_v6 = vld [vmem:[#allocation8 + $0x78] sm:$0xf0]  ;;  %v665_v7 = vor.u32 %v709_v4, %v664_v2  ;;  %v708_v9 = vld [vmem:[#allocation8 + $0xf4] sm:$0xf]  ;;  %v592_v11 = vld [vmem:[#allocation8 + $0x60] sm:$0xf] }
  0x11   :  { %v605_v8 = vor.u32 %v692_v5, %v602_v6  ;;  %v666_v10 = vld [vmem:[#allocation8 + $0xf8] sm:$0xf0]  ;;  %358 = vmatpush.bf16.msra.mxu0 %v601_v3  ;;  %v691_v13 = vld [vmem:[#allocation8 + $0x64] sm:$0xf0]  ;;  %v656_v14 = vld [vmem:[#allocation8 + $0xe0] sm:$0xf] }
  0x12   :  { %v669_v12 = vor.u32 %v708_v9, %v666_v10  ;;  %v707_v15 = vld [vmem:[#allocation8 + $0xe4] sm:$0xf0]  ;;  %387 = vmatpush.bf16.msra.mxu1 %v665_v7  ;;  %v593_v16 = vor.u32 %v691_v13, %v592_v11  ;;  %v690_v18 = vld [vmem:[#allocation8 + $0x64] sm:$0xf]  ;;  %v594_v19 = vld [vmem:[#allocation8 + $0x68] sm:$0xf0] }
  0x13   :  { %416 = vmatpush.bf16.msra.mxu2 %v605_v8  ;;  %v657_v17 = vor.u32 %v707_v15, %v656_v14  ;;  %v706_v20 = vld [vmem:[#allocation8 + $0xe4] sm:$0xf]  ;;  %v597_v21 = vor.u32 %v690_v18, %v594_v19  ;;  %v658_v22 = vld [vmem:[#allocation8 + $0xe8] sm:$0xf0]  ;;  %v584_v23 = vld [vmem:[#allocation8 + $0x50] sm:$0xf] }
  0x14   :  { %445 = vmatpush.bf16.msra.mxu3 %v669_v12  ;;  %v689_v24 = vld [vmem:[#allocation8 + $0x54] sm:$0xf0]  ;;  %v661_v25 = vor.u32 %v706_v20, %v658_v22  ;;  %v648_v26 = vld [vmem:[#allocation8 + $0xd0] sm:$0xf]  ;;  %v688_v28 = vld [vmem:[#allocation8 + $0x54] sm:$0xf] }
  0x15   :  { %v705_v27 = vld [vmem:[#allocation8 + $0xd4] sm:$0xf0]  ;;  %359 = vmatpush.bf16.msra.mxu0 %v593_v16  ;;  %v585_v29 = vor.u32 %v689_v24, %v584_v23  ;;  %v586_v30 = vld [vmem:[#allocation8 + $0x58] sm:$0xf0]  ;;  %v704_v31 = vld [vmem:[#allocation8 + $0xd4] sm:$0xf] }
  0x16   :  { %v650_v32 = vld [vmem:[#allocation8 + $0xd8] sm:$0xf0]  ;;  %388 = vmatpush.bf16.msra.mxu1 %v657_v17  ;;  %v649_v33 = vor.u32 %v705_v27, %v648_v26  ;;  %v589_v34 = vor.u32 %v688_v28, %v586_v30  ;;  %v576_v35 = vld [vmem:[#allocation8 + $0x40] sm:$0xf]  ;;  %v687_v36 = vld [vmem:[#allocation8 + $0x44] sm:$0xf0] }
  0x17   :  { %417 = vmatpush.bf16.msra.mxu2 %v597_v21  ;;  %v640_v37 = vld [vmem:[#allocation8 + $0xc0] sm:$0xf]  ;;  %v653_v38 = vor.u32 %v704_v31, %v650_v32  ;;  %v703_v39 = vld [vmem:[#allocation8 + $0xc4] sm:$0xf0]  ;;  %v686_v40 = vld [vmem:[#allocation8 + $0x44] sm:$0xf]  ;;  %v577_v44 = vor.u32 %v687_v36, %v576_v35 }
  0x18   :  { %446 = vmatpush.bf16.msra.mxu3 %v661_v25  ;;  %v578_v41 = vld [vmem:[#allocation8 + $0x48] sm:$0xf0]  ;;  %v702_v42 = vld [vmem:[#allocation8 + $0xc4] sm:$0xf]  ;;  %v568_v45 = vld [vmem:[#allocation8 + $0x30] sm:$0xf]  ;;  %v641_v46 = vor.u32 %v703_v39, %v640_v37 }
  0x19   :  { %v642_v43 = vld [vmem:[#allocation8 + $0xc8] sm:$0xf0]  ;;  %360 = vmatpush.bf16.msra.mxu0 %v585_v29  ;;  %v581_v47 = vor.u32 %v686_v40, %v578_v41  ;;  %v685_v48 = vld [vmem:[#allocation8 + $0x34] sm:$0xf0]  ;;  %v632_v49 = vld [vmem:[#allocation8 + $0xb0] sm:$0xf] }
  0x1a   :  { %389 = vmatpush.bf16.msra.mxu1 %v649_v33  ;;  %v701_v50 = vld [vmem:[#allocation8 + $0xb4] sm:$0xf0]  ;;  %v645_v51 = vor.u32 %v702_v42, %v642_v43  ;;  %v684_v52 = vld [vmem:[#allocation8 + $0x34] sm:$0xf]  ;;  %v570_v53 = vld [vmem:[#allocation8 + $0x38] sm:$0xf0]  ;;  %v569_v58 = vor.u32 %v685_v48, %v568_v45 }
  0x1b   :  { %418 = vmatpush.bf16.msra.mxu2 %v589_v34  ;;  %v700_v54 = vld [vmem:[#allocation8 + $0xb4] sm:$0xf]  ;;  %v634_v55 = vld [vmem:[#allocation8 + $0xb8] sm:$0xf0]  ;;  %v560_v56 = vld [vmem:[#allocation8 + $0x20] sm:$0xf]  ;;  %v633_v62 = vor.u32 %v701_v50, %v632_v49  ;;  %v573_v63 = vor.u32 %v684_v52, %v570_v53 }
  0x1c   :  { %447 = vmatpush.bf16.msra.mxu3 %v653_v38  ;;  %v683_v57 = vld [vmem:[#allocation8 + $0x24] sm:$0xf0]  ;;  %v624_v59 = vld [vmem:[#allocation8 + $0xa0] sm:$0xf]  ;;  %v682_v61 = vld [vmem:[#allocation8 + $0x24] sm:$0xf]  ;;  %v637_v3 = vor.u32 %v700_v54, %v634_v55 }
  0x1d   :  { %361 = vmatpush.bf16.msra.mxu0 %v577_v44  ;;  %v699_v60 = vld [vmem:[#allocation8 + $0xa4] sm:$0xf0]  ;;  %v562_v0 = vld [vmem:[#allocation8 + $0x28] sm:$0xf0]  ;;  %v698_v1 = vld [vmem:[#allocation8 + $0xa4] sm:$0xf]  ;;  %v561_v11 = vor.u32 %v683_v57, %v560_v56 }
  0x1e   :  { %390 = vmatpush.bf16.msra.mxu1 %v641_v46  ;;  %v626_v2 = vld [vmem:[#allocation8 + $0xa8] sm:$0xf0]  ;;  %v552_v4 = vld [vmem:[#allocation8 + $0x10] sm:$0xf]  ;;  %v681_v5 = vld [vmem:[#allocation8 + $0x14] sm:$0xf0]  ;;  %v625_v15 = vor.u32 %v699_v60, %v624_v59  ;;  %v565_v16 = vor.u32 %v682_v61, %v562_v0 }
  0x1f   :  { %419 = vmatpush.bf16.msra.mxu2 %v581_v47  ;;  %v616_v6 = vld [vmem:[#allocation8 + $0x90] sm:$0xf]  ;;  %v697_v7 = vld [vmem:[#allocation8 + $0x94] sm:$0xf0]  ;;  %v680_v8 = vld [vmem:[#allocation8 + $0x14] sm:$0xf]  ;;  %v629_v20 = vor.u32 %v698_v1, %v626_v2  ;;  %v553_v24 = vor.u32 %v681_v5, %v552_v4 }
  0x20   :  { %448 = vmatpush.bf16.msra.mxu3 %v645_v51  ;;  %v554_v9 = vld [vmem:[#allocation8 + $0x18] sm:$0xf0]  ;;  %v696_v10 = vld [vmem:[#allocation8 + $0x94] sm:$0xf]  ;;  %v860_v13 = vld [vmem:[#allocation8] sm:$0xf]  ;;  %v617_v25 = vor.u32 %v697_v7, %v616_v6 }
  0x21   :  { %362 = vmatpush.bf16.msra.mxu0 %v569_v58  ;;  %v618_v12 = vld [vmem:[#allocation8 + $0x98] sm:$0xf0]  ;;  %v862_v14 = vld [vmem:[#allocation8 + $0x4] sm:$0xf0]  ;;  %v608_v17 = vld [vmem:[#allocation8 + $0x80] sm:$0xf]  ;;  %v557_v29 = vor.u32 %v680_v8, %v554_v9 }
  0x22   :  { %391 = vmatpush.bf16.msra.mxu1 %v633_v62  ;;  %v695_v18 = vld [vmem:[#allocation8 + $0x84] sm:$0xf0]  ;;  %v678_v19 = vld [vmem:[#allocation8 + $0x4] sm:$0xf]  ;;  %v546_v21 = vld [vmem:[#allocation8 + $0x8] sm:$0xf0]  ;;  %v621_v30 = vor.u32 %v696_v10, %v618_v12  ;;  %v545_v36 = vor.u32 %v862_v14, %v860_v13 }
  0x23   :  { %420 = vmatpush.bf16.msra.mxu2 %v573_v63  ;;  %v64_v22 = vld [vmem:[#allocation3] sm:$0xff]  ;;  %v65_v23 = vld [vmem:[#allocation3 + $0x8] sm:$0xff]  ;;  %v66_v26 = vld [vmem:[#allocation3 + $0x10] sm:$0xff]  ;;  %v609_v37 = vor.u32 %v695_v18, %v608_v17  ;;  %v549_v38 = vor.u32 %v678_v19, %v546_v21  ;;  %s827_s2 = smov [#allocation9]   ;;  %s496_s5 = sshll.u32 %s895_s3, 4  ;;  %s497_s5 = int_to_ptr.hbm [resolvable:$true] %s496_s5 }
  0x24   :  { %449 = vmatpush.bf16.msra.mxu3 %v637_v3  ;;  %v67_v27 = vld [vmem:[#allocation3 + $0x18] sm:$0xff]  ;;  %v80_v28 = vld [vmem:[#allocation6] sm:$0x3]  ;;  %v69_v34 = vld [vmem:[#allocation3 + $0x28] sm:$0xff]  ;;  %s494_s29 = sshll.u32 %s827_s2, 4  ;;  %s495_s29 = int_to_ptr.vmem [resolvable:$true] %s494_s29 }
  0x25   :  { %363 = vmatpush.bf16.msra.mxu0 %v561_v11  ;;  %v864_v31 = vperm.slane %v80_v28, 0  ;;  %v866_v32 = vperm.slane %v80_v28, 1  ;;  %v68_v33 = vld [vmem:[#allocation3 + $0x20] sm:$0xff]  ;;  %v70_v35 = vld [vmem:[#allocation3 + $0x30] sm:$0xff]  ;;  %v71_v39 = vld [vmem:[#allocation3 + $0x38] sm:$0xff] }
  0x26   :  { %392 = vmatpush.bf16.msra.mxu1 %v625_v15  ;;  %v72_v44 = vld [vmem:[#allocation3 + $0x40] sm:$0xff]  ;;  %v73_v45 = vld [vmem:[#allocation3 + $0x48] sm:$0xff]  ;;  %v74_v46 = vld [vmem:[#allocation3 + $0x50] sm:$0xff] }
  0x27   :  { %421 = vmatpush.bf16.msra.mxu2 %v565_v16  ;;  %v86_v40 = vmul.f32 %v864_v31, %v64_v22  ;;  %v87_v41 = vmul.f32 %v866_v32, %v65_v23  ;;  %v88_v42 = vmul.f32 %v864_v31, %v66_v26  ;;  %v89_v43 = vmul.f32 %v866_v32, %v67_v27  ;;  %v694_v47 = vld [vmem:[#allocation8 + $0x84] sm:$0xf]  ;;  %v610_v48 = vld [vmem:[#allocation8 + $0x88] sm:$0xf0]  ;;  %v75_v53 = vld [vmem:[#allocation3 + $0x58] sm:$0xff] }
  0x28   :  { %450 = vmatpush.bf16.msra.mxu3 %v629_v20  ;;  %v90_v49 = vmul.f32 %v864_v31, %v68_v33  ;;  %v91_v50 = vmul.f32 %v866_v32, %v69_v34  ;;  %v92_v51 = vmul.f32 %v864_v31, %v70_v35  ;;  %v93_v52 = vmul.f32 %v866_v32, %v71_v39  ;;  %v76_v7 = vld [vmem:[#allocation3 + $0x60] sm:$0xff]  ;;  %v77_v8 = vld [vmem:[#allocation3 + $0x68] sm:$0xff]  ;;  %v78_v9 = vld [vmem:[#allocation3 + $0x70] sm:$0xff] }
  0x29   :  { %364 = vmatpush.bf16.msra.mxu0 %v553_v24  ;;  %v102_v54 = vpack.c.bf16 %v87_v41, %v86_v40  ;;  %v103_v55 = vpack.c.bf16 %v89_v43, %v88_v42  ;;  %v94_v56 = vmul.f32 %v864_v31, %v72_v44  ;;  %v95_v57 = vmul.f32 %v866_v32, %v73_v45  ;;  %v79_v10 = vld [vmem:[#allocation3 + $0x78] sm:$0xff] }
  0x2a   :  { %393 = vmatpush.bf16.msra.mxu1 %v617_v25  ;;  %v104_v58 = vpack.c.bf16 %v91_v50, %v90_v49  ;;  %v105_v59 = vpack.c.bf16 %v93_v52, %v92_v51  ;;  %v96_v60 = vmul.f32 %v864_v31, %v74_v46  ;;  %v613_v61 = vor.u32 %v694_v47, %v610_v48 }
  0x2b   :  { %422 = vmatpush.bf16.msra.mxu2 %v557_v29  ;;  %110 = vst [vmem:[#allocation2] sm:$0xff] %v102_v54  ;;  %v97_v62 = vmul.f32 %v866_v32, %v75_v53  ;;  %v106_v63 = vpack.c.bf16 %v95_v57, %v94_v56  ;;  %v98_v11 = vmul.f32 %v864_v31, %v76_v7 }
  0x2c   :  { %451 = vmatpush.bf16.msra.mxu3 %v621_v30  ;;  %111 = vst [vmem:[#allocation2 + $0x8] sm:$0xff] %v103_v55  ;;  %v99_v12 = vmul.f32 %v866_v32, %v77_v8  ;;  %v100_v13 = vmul.f32 %v864_v31, %v78_v9  ;;  %v101_v14 = vmul.f32 %v866_v32, %v79_v10 }
  0x2d   :  { %365 = vmatpush.bf16.msra.mxu0 %v545_v36  ;;  %112 = vst [vmem:[#allocation2 + $0x10] sm:$0xff] %v104_v58  ;;  %v107_v0 = vpack.c.bf16 %v97_v62, %v96_v60 }
  0x2e   :  { %394 = vmatpush.bf16.msra.mxu1 %v609_v37  ;;  %113 = vst [vmem:[#allocation2 + $0x18] sm:$0xff] %v105_v59  ;;  %v108_v15 = vpack.c.bf16 %v99_v12, %v98_v11  ;;  %v109_v16 = vpack.c.bf16 %v101_v14, %v100_v13 }
  0x2f   :  { %423 = vmatpush.bf16.msra.mxu2 %v549_v38  ;;  %114 = vst [vmem:[#allocation2 + $0x20] sm:$0xff] %v106_v63 }
  0x30   :  { %452 = vmatpush.bf16.msra.mxu3 %v613_v61  ;;  %115 = vst [vmem:[#allocation2 + $0x28] sm:$0xff] %v107_v0 }
  0x31   :  { %116 = vst [vmem:[#allocation2 + $0x30] sm:$0xff] %v108_v15 }
  0x32   :  { %v512_v1 = vld [vmem:[#allocation2] sm:$0xf]  ;;  %v670_v2 = vld [vmem:[#allocation2 + $0x4] sm:$0xf]  ;;  %117 = vst [vmem:[#allocation2 + $0x38] sm:$0xff] %v109_v16 }
  0x33   :  { %v671_v3 = vld [vmem:[#allocation2 + $0x4] sm:$0xf0]  ;;  %v514_v4 = vld [vmem:[#allocation2 + $0x8] sm:$0xf0] }
  0x34   :  { %v513_v5 = vor.u32 %v671_v3, %v512_v1  ;;  %v517_v6 = vor.u32 %v670_v2, %v514_v4  ;;  %v520_v17 = vld [vmem:[#allocation2 + $0x10] sm:$0xf]  ;;  %v672_v19 = vld [vmem:[#allocation2 + $0x14] sm:$0xf] }
  0x35   :  { %v673_v18 = vld [vmem:[#allocation2 + $0x14] sm:$0xf0]  ;;  %v522_v20 = vld [vmem:[#allocation2 + $0x18] sm:$0xf0] }
  0x36   :  { %366 = vmatmul.bf16.vlgmr.msra.gmra.mxu0 %v513_v5  ;;  %395 = vmatmul.bf16.vlgmr.msra.gmra.mxu1 %v517_v6  ;;  %v521_v21 = vor.u32 %v673_v18, %v520_v17  ;;  %v525_v22 = vor.u32 %v672_v19, %v522_v20  ;;  %v528_v23 = vld [vmem:[#allocation2 + $0x20] sm:$0xf]  ;;  %v674_v25 = vld [vmem:[#allocation2 + $0x24] sm:$0xf] }
  0x37   :  { %424 = vmatmul.bf16.vlgmr.msra.gmra.mxu2 %v513_v5  ;;  %453 = vmatmul.bf16.vlgmr.msra.gmra.mxu3 %v517_v6  ;;  %v675_v24 = vld [vmem:[#allocation2 + $0x24] sm:$0xf0]  ;;  %v530_v26 = vld [vmem:[#allocation2 + $0x28] sm:$0xf0] }
  0x38   :  { %v529_v27 = vor.u32 %v675_v24, %v528_v23  ;;  %v533_v28 = vor.u32 %v674_v25, %v530_v26  ;;  %v536_v29 = vld [vmem:[#allocation2 + $0x30] sm:$0xf]  ;;  %v676_v31 = vld [vmem:[#allocation2 + $0x34] sm:$0xf] }
  0x39   :  { %v677_v30 = vld [vmem:[#allocation2 + $0x34] sm:$0xf0]  ;;  %v538_v32 = vld [vmem:[#allocation2 + $0x38] sm:$0xf0] }
  0x3a   :  { %v537_v33 = vor.u32 %v677_v30, %v536_v29  ;;  %v541_v34 = vor.u32 %v676_v31, %v538_v32 }
  0x46   :  { %371 = vmatmul.bf16.gmra.mxu0 %v521_v21  ;;  %400 = vmatmul.bf16.gmra.mxu1 %v525_v22 }
  0x47   :  { %429 = vmatmul.bf16.gmra.mxu2 %v521_v21  ;;  %458 = vmatmul.bf16.gmra.mxu3 %v525_v22 }
  0x56   :  { %376 = vmatmul.bf16.gmra.mxu0 %v529_v27  ;;  %405 = vmatmul.bf16.gmra.mxu1 %v533_v28 }
  0x57   :  { %434 = vmatmul.bf16.gmra.mxu2 %v529_v27  ;;  %463 = vmatmul.bf16.gmra.mxu3 %v533_v28 }
  0x66   :  { %381 = vmatmul.bf16.gmra.mxu0 %v537_v33  ;;  %410 = vmatmul.bf16.gmra.mxu1 %v541_v34 }
  0x67   :  { %439 = vmatmul.bf16.gmra.mxu2 %v537_v33  ;;  %468 = vmatmul.bf16.gmra.mxu3 %v541_v34 }
  0xb3   :  { %v367_v35 = vpop.f32.mrf.mxu0  ;;  %v396_v36 = vpop.f32.mrf.mxu1 }
  0xb4   :  { %v397_v37 = vadd.f32 %v396_v36, %v367_v35 }
  0xb6   :  { %474 = vst [vmem:[#allocation9] sm:$0xff] %v397_v37 }
  0xba   :  { %v425_v38 = vpop.f32.mrf.mxu2  ;;  %v454_v39 = vpop.f32.mrf.mxu3 }
  0xbb   :  { %v455_v40 = vadd.f32 %v454_v39, %v425_v38  ;;  %v369_v41 = vpop.f32.mrf.mxu0  ;;  %v398_v42 = vpop.f32.mrf.mxu1 }
  0xbc   :  { %v399_v43 = vadd.f32 %v398_v42, %v369_v41 }
  0xbd   :  { %475 = vst [vmem:[#allocation9 + $0x8] sm:$0xff] %v455_v40 }
  0xbe   :  { %476 = vst [vmem:[#allocation9 + $0x10] sm:$0xff] %v399_v43 }
  0xc2   :  { %v427_v44 = vpop.f32.mrf.mxu2  ;;  %v456_v45 = vpop.f32.mrf.mxu3 }
  0xc3   :  { %v457_v46 = vadd.f32 %v456_v45, %v427_v44  ;;  %v372_v47 = vpop.f32.mrf.mxu0  ;;  %v401_v48 = vpop.f32.mrf.mxu1 }
  0xc4   :  { %v402_v49 = vadd.f32 %v401_v48, %v372_v47 }
  0xc5   :  { %477 = vst [vmem:[#allocation9 + $0x18] sm:$0xff] %v457_v46 }
  0xc6   :  { %478 = vst [vmem:[#allocation9 + $0x20] sm:$0xff] %v402_v49 }
  0xca   :  { %v430_v50 = vpop.f32.mrf.mxu2  ;;  %v459_v51 = vpop.f32.mrf.mxu3 }
  0xcb   :  { %v460_v52 = vadd.f32 %v459_v51, %v430_v50  ;;  %v374_v53 = vpop.f32.mrf.mxu0  ;;  %v403_v54 = vpop.f32.mrf.mxu1 }
  0xcc   :  { %v404_v55 = vadd.f32 %v403_v54, %v374_v53 }
  0xcd   :  { %479 = vst [vmem:[#allocation9 + $0x28] sm:$0xff] %v460_v52 }
  0xce   :  { %480 = vst [vmem:[#allocation9 + $0x30] sm:$0xff] %v404_v55 }
  0xd2   :  { %v432_v56 = vpop.f32.mrf.mxu2  ;;  %v461_v57 = vpop.f32.mrf.mxu3 }
  0xd3   :  { %v462_v58 = vadd.f32 %v461_v57, %v432_v56  ;;  %v377_v59 = vpop.f32.mrf.mxu0  ;;  %v406_v60 = vpop.f32.mrf.mxu1 }
  0xd4   :  { %v407_v61 = vadd.f32 %v406_v60, %v377_v59 }
  0xd5   :  { %481 = vst [vmem:[#allocation9 + $0x38] sm:$0xff] %v462_v58 }
  0xd6   :  { %482 = vst [vmem:[#allocation9 + $0x40] sm:$0xff] %v407_v61 }
  0xda   :  { %v435_v62 = vpop.f32.mrf.mxu2  ;;  %v464_v63 = vpop.f32.mrf.mxu3 }
  0xdb   :  { %v465_v0 = vadd.f32 %v464_v63, %v435_v62  ;;  %v379_v1 = vpop.f32.mrf.mxu0  ;;  %v408_v2 = vpop.f32.mrf.mxu1 }
  0xdc   :  { %v409_v3 = vadd.f32 %v408_v2, %v379_v1 }
  0xdd   :  { %483 = vst [vmem:[#allocation9 + $0x48] sm:$0xff] %v465_v0 }
  0xde   :  { %484 = vst [vmem:[#allocation9 + $0x50] sm:$0xff] %v409_v3 }
  0xe2   :  { %v437_v4 = vpop.f32.mrf.mxu2  ;;  %v466_v5 = vpop.f32.mrf.mxu3 }
  0xe3   :  { %v467_v6 = vadd.f32 %v466_v5, %v437_v4  ;;  %v382_v7 = vpop.f32.mrf.mxu0  ;;  %v411_v8 = vpop.f32.mrf.mxu1 }
  0xe4   :  { %v412_v9 = vadd.f32 %v411_v8, %v382_v7 }
  0xe5   :  { %485 = vst [vmem:[#allocation9 + $0x58] sm:$0xff] %v467_v6 }
  0xe6   :  { %486 = vst [vmem:[#allocation9 + $0x60] sm:$0xff] %v412_v9 }
  0xea   :  { %v440_v10 = vpop.f32.mrf.mxu2  ;;  %v469_v11 = vpop.f32.mrf.mxu3 }
  0xeb   :  { %v470_v12 = vadd.f32 %v469_v11, %v440_v10  ;;  %v384_v13 = vpop.f32.mrf.mxu0  ;;  %v413_v14 = vpop.f32.mrf.mxu1 }
  0xec   :  { %v414_v15 = vadd.f32 %v413_v14, %v384_v13 }
  0xed   :  { %487 = vst [vmem:[#allocation9 + $0x68] sm:$0xff] %v470_v12 }
  0xee   :  { %488 = vst [vmem:[#allocation9 + $0x70] sm:$0xff] %v414_v15 }
  0xf2   :  { %v442_v16 = vpop.f32.mrf.mxu2  ;;  %v471_v17 = vpop.f32.mrf.mxu3 }
  0xf3   :  { %v472_v18 = vadd.f32 %v471_v17, %v442_v16 }
  0xf5   :  { %489 = vst [vmem:[#allocation9 + $0x78] sm:$0xff] %v472_v18 }
  0xf6   :  { %502 = dma.vmem_to_hbm [thread:$0]  %s495_s29, 2048, %s497_s5, [#allocation5], %s822_s22, %s822_s22, %s823_s23  }
  0xf7   :  { %818 = dma.done.wait [#allocation5], 2048  }
  0xf8   :  { %819 = vsyncadd [#allocation5], 4294965248 }
  0xf9   :  { %507 = vsyncpa [#allocation4], 1 }
  0xfa   :  { %508 = vsyncpa [#allocation7], 1 }
  0xfb   :  { %509 = vsyncpa [#allocation5], 1 }

</bundles_post_ra>
